<compile_context>
chip_gen: v7x
topology: tpu7x:2x2x1
jax: 0.10.0
libtpu: 0.0.40
codegen_flags: <defaults>
</compile_context>

<pallas_src>
import functools
import math

import jax
import jax.numpy as jnp
from jax.experimental import pallas as pl
from jax.experimental.pallas import tpu as pltpu


def _cdiv(a, b):
    return -(-a // b)


def _round_up(x, m):
    return ((x + m - 1) // m) * m


def _tpu_info():
    """(per-core VMEM bytes, TensorCore count); conservative fallbacks."""
    vmem_cap = 64 << 20      # v7x lower bound; safe for v5e/v6e too
    cores = 1
    try:
        info = pltpu.get_tpu_info()
        cap = getattr(info, "vmem_capacity_bytes", None)
        if cap:
            vmem_cap = int(cap)
        for name in ("num_cores", "core_count", "tensorcore_count", "num_tensorcores"):
            c = getattr(info, name, None)
            if c:
                cores = int(c)
                break
    except Exception:
        pass
    return vmem_cap, cores


def _choose_tiles(N, C, p_item, t_item, vmem_cap, cores):
    """Pick (tile_rows, tile_c) by bytes, then rebalance rows for low waste."""
    itemsize_min = max(1, min(p_item, t_item))
    itemsize_max = max(p_item, t_item)
    row_align = 8 * max(1, 4 // itemsize_min)     # f32:8, bf16:16, int8:32

    # Per-block element budget. Live VMEM per step is approximately:
    #   2 inputs x 2 pipeline buffers (native dtype)  -> 2*(p+t) bytes/elem
    #   ~3 f32 intermediates (p, t, prod)             -> 12 bytes/elem
    bytes_per_elem = 2 * (p_item + t_item) + 12
    max_elems = (vmem_cap * 7 // 10) // bytes_per_elem
    blk_cap = (16 << 20) if vmem_cap >= (96 << 20) else (6 << 20)
    max_elems = min(max_elems, blk_cap // itemsize_max)
    max_elems = max(max_elems, row_align * 128)

    # Class-axis tile: keep the full class axis unless it cannot fit even with
    # minimal rows; otherwise tile C in lane-aligned chunks (ragged tail is
    # masked in-kernel -- no padded copies).
    if row_align * C <= max_elems or C <= 256:
        tile_c = C
    else:
        tile_c = min(((max_elems // row_align) // 128) * 128, 8192)
        tile_c = max(tile_c, 128)
        if tile_c >= C:
            tile_c = C

    # Row tile: fill the byte budget, then rebalance against the actual grid
    # step count so the ragged last tile wastes < row_align rows, and round
    # the parallel step count to the TensorCore count on multi-core chips.
    tile_rows = max(row_align, (max_elems // max(1, tile_c)) // row_align * row_align)
    tile_rows = min(tile_rows, _round_up(N, row_align))
    steps = _cdiv(N, tile_rows)
    if cores > 1:
        steps = _round_up(steps, cores)
    tile_rows = min(tile_rows, _round_up(_cdiv(N, steps), row_align))
    tile_rows = max(tile_rows, row_align)
    if tile_rows >= N:
        tile_rows = N        # single block equal to the full row dim

    return tile_rows, tile_c


def _cce_kernel_single(preds_ref, target_ref, out_ref, *, log_c):
    """Fast path: whole class axis in one block; no scratch accumulator."""
    p = jnp.clip(preds_ref[...].astype(jnp.float32), 1e-10, 1.0)
    t = target_ref[...].astype(jnp.float32)
    s = jnp.sum(t * p, axis=1, keepdims=True)          # one XLU reduce / row tile
    out_ref[...] = log_c - jnp.log(s)                   # EUP log; no per-row divide


def _cce_kernel_tiled(preds_ref, target_ref, out_ref, acc_ref, *,
                      log_c, c_total, tile_c):
    """Grid = (row_tiles, class_tiles); class axis last (reduction)."""
    c_idx = pl.program_id(1)
    last = pl.num_programs(1) - 1

    @pl.when(c_idx == 0)
    def _init():
        acc_ref[...] = jnp.zeros_like(acc_ref)

    # Cast in-kernel (VPU) so HBM streams the native dtype.
    p = jnp.clip(preds_ref[...].astype(jnp.float32), 1e-10, 1.0)
    t = target_ref[...].astype(jnp.float32)
    prod = t * p                                        # (tile_rows, tile_c) f32

    def _fold(x):
        # Lane-aligned static slices -> pure VPU adds into a lane-wide
        # (tile_rows, 128) partial; the single cross-lane (XLU) reduce is
        # deferred to the finalize branch (once per row tile).
        acc = x[:, 0:128]
        for j in range(1, tile_c // 128):
            acc = acc + x[:, j * 128:(j + 1) * 128]
        return acc

    rem = c_total % tile_c                              # static ragged tail size
    if rem == 0:
        acc_ref[...] += _fold(prod)
    else:
        @pl.when(c_idx != last)
        def _full_tile():
            acc_ref[...] += _fold(prod)

        @pl.when(c_idx == last)
        def _ragged_tile():
            col = jax.lax.broadcasted_iota(jnp.int32, prod.shape, 1)
            acc_ref[...] += _fold(jnp.where(col < rem, prod, 0.0))

    @pl.when(c_idx == last)
    def _finalize():
        s = jnp.sum(acc_ref[...], axis=1, keepdims=True)
        out_ref[...] = log_c - jnp.log(s)


def loss_crossentropy_agg(preds, target, *, _tile_rows=None, _tile_c=None):
    """preds, target: (N, C) arrays (any float dtype). Returns (N,) float32."""
    assert preds.ndim == 2 and preds.shape == target.shape
    N, C = preds.shape

    p_item = jnp.dtype(preds.dtype).itemsize
    t_item = jnp.dtype(target.dtype).itemsize
    vmem_cap, cores = _tpu_info()

    if _tile_rows is not None and _tile_c is not None:   # test/tuning hook
        tile_rows, tile_c = int(_tile_rows), int(_tile_c)
    else:
        tile_rows, tile_c = _choose_tiles(N, C, p_item, t_item, vmem_cap, cores)

    row_steps = _cdiv(N, tile_rows)
    class_steps = _cdiv(C, tile_c)
    log_c = math.log(C)

    # VMEM budget with headroom for the in-kernel f32 upcast intermediates.
    blk = tile_rows * tile_c
    vmem_need = (2 * blk * (p_item + t_item)      # double-buffered native inputs
                 + 3 * blk * 4                    # f32 p / t / prod
                 + tile_rows * (128 + 8) * 4      # accumulator + output block
                 + (2 << 20))                     # slack
    vmem_limit = int(min(vmem_cap, max(vmem_need, 16 << 20)))

    if class_steps == 1:
        kernel = functools.partial(_cce_kernel_single, log_c=log_c)
        grid_spec = pltpu.PrefetchScalarGridSpec(
            num_scalar_prefetch=0,
            grid=(row_steps,),
            in_specs=[
                pl.BlockSpec((tile_rows, tile_c), lambda i: (i, 0)),
                pl.BlockSpec((tile_rows, tile_c), lambda i: (i, 0)),
            ],
            out_specs=pl.BlockSpec((tile_rows, 1), lambda i: (i, 0)),
        )
        dims = ("parallel",)
    else:
        kernel = functools.partial(
            _cce_kernel_tiled, log_c=log_c, c_total=C, tile_c=tile_c)
        grid_spec = pltpu.PrefetchScalarGridSpec(
            num_scalar_prefetch=0,
            grid=(row_steps, class_steps),
            in_specs=[
                pl.BlockSpec((tile_rows, tile_c), lambda i, c: (i, c)),
                pl.BlockSpec((tile_rows, tile_c), lambda i, c: (i, c)),
            ],
            out_specs=pl.BlockSpec((tile_rows, 1), lambda i, c: (i, 0)),
            scratch_shapes=[pltpu.VMEM((tile_rows, 128), jnp.float32)],
        )
        dims = ("parallel", "arbitrary")

    out2d = pl.pallas_call(
        kernel,
        out_shape=jax.ShapeDtypeStruct((N, 1), jnp.float32),
        grid_spec=grid_spec,
        compiler_params=pltpu.CompilerParams(
            dimension_semantics=dims,
            vmem_limit_bytes=vmem_limit,
        ),
    )(preds, target)

    # TODO(synk): optional lane-dense (1, tile_rows) output layout skipped;
    # the (N, 1) writeback is negligible vs. the (N, C) input stream.
    return out2d.reshape(N)


def _reference(preds, target):
    p = jnp.clip(preds.astype(jnp.float32), 1e-10, 1.0)
    return -jnp.log(jnp.mean(target.astype(jnp.float32) * p, axis=1))


if __name__ == "__main__":
    key = jax.random.PRNGKey(0)
    k1, k2, k3, k4, k5, k6 = jax.random.split(key, 6)

    # Case 1: aligned small batch (matches the module's (N, C) inputs).
    N, C = 8, 32
    preds = jax.nn.softmax(jax.random.normal(k1, (N, C), dtype=jnp.float32), axis=-1)
    target = jax.nn.one_hot(jax.random.randint(k2, (N,), 0, C), C, dtype=jnp.float32)
    out = jax.block_until_ready(loss_crossentropy_agg(preds, target))
    ref = _reference(preds, target)
    assert out.shape == (N,)
    assert jnp.allclose(out, ref, rtol=1e-5, atol=1e-5), (out, ref)

    # Case 2: ragged batch, automatic tiling (no wrapper-side padding copies).
    N2, C2 = 10, 48
    preds2 = jax.nn.softmax(jax.random.normal(k3, (N2, C2), dtype=jnp.float32), axis=-1)
    target2 = jax.nn.one_hot(jax.random.randint(k4, (N2,), 0, C2), C2, dtype=jnp.float32)
    out2 = jax.block_until_ready(loss_crossentropy_agg(preds2, target2))
    ref2 = _reference(preds2, target2)
    assert out2.shape == (N2,)
    assert jnp.allclose(out2, ref2, rtol=1e-5, atol=1e-5), (out2, ref2)

    # Case 3: force the class-tiled path with ragged rows AND a ragged last
    # class tile -> exercises the in-kernel masking that replaced jnp.pad.
    N3, C3 = 20, 200
    preds3 = jax.nn.softmax(jax.random.normal(k5, (N3, C3), dtype=jnp.float32), axis=-1)
    target3 = jax.nn.one_hot(jax.random.randint(k6, (N3,), 0, C3), C3, dtype=jnp.float32)
    out3 = jax.block_until_ready(
        loss_crossentropy_agg(preds3, target3, _tile_rows=8, _tile_c=128))
    ref3 = _reference(preds3, target3)
    assert out3.shape == (N3,)
    assert jnp.allclose(out3, ref3, rtol=1e-5, atol=1e-5), (out3, ref3)

    print("KERNEL_OK")
</pallas_src>

<mosaic_0001>
module attributes {stable_mosaic.version = 11 : i64} {
  func.func @_cce_kernel_single(%arg0: i32, %arg1: memref<8x32xf32, #tpu.memory_space<vmem>>, %arg2: memref<8x32xf32, #tpu.memory_space<vmem>>, %arg3: memref<8x1xf32, #tpu.memory_space<vmem>>) attributes {dimension_semantics = [#tpu.dimension_semantics<parallel>], iteration_bounds = array<i64: 1>, scalar_prefetch = 0 : i64, scratch_operands = 0 : i64, tpu.core_type = #tpu.core_type<tc>, window_params = [{transform_indices = @transform_0, window_bounds = array<i64: 8, 32>}, {transform_indices = @transform_1, window_bounds = array<i64: 8, 32>}, {transform_indices = @transform_2, window_bounds = array<i64: 8, 1>}]} {
    %c0 = arith.constant 0 : index
    %c0_0 = arith.constant 0 : index
    %0 = vector.load %arg1[%c0, %c0_0] : memref<8x32xf32, #tpu.memory_space<vmem>>, vector<8x32xf32>
    %cst = arith.constant 1.000000e-10 : f32
    %cst_1 = arith.constant 1.000000e+00 : f32
    %1 = vector.broadcast %cst : f32 to vector<8x32xf32>
    %2 = arith.maximumf %1, %0 : vector<8x32xf32>
    %3 = vector.broadcast %cst_1 : f32 to vector<8x32xf32>
    %4 = arith.minimumf %3, %2 : vector<8x32xf32>
    %c0_2 = arith.constant 0 : index
    %c0_3 = arith.constant 0 : index
    %5 = vector.load %arg2[%c0_2, %c0_3] : memref<8x32xf32, #tpu.memory_space<vmem>>, vector<8x32xf32>
    %6 = arith.mulf %5, %4 : vector<8x32xf32>
    %cst_4 = arith.constant dense<0.000000e+00> : vector<8xf32>
    %7 = vector.multi_reduction <add>, %6, %cst_4 [1] : vector<8x32xf32> to vector<8xf32>
    %8 = vector.shape_cast %7 : vector<8xf32> to vector<8x1xf32>
    %9 = math.log %8 : vector<8x1xf32>
    %cst_5 = arith.constant 3.46573591 : f32
    %10 = vector.broadcast %cst_5 : f32 to vector<8x1xf32>
    %11 = arith.subf %10, %9 : vector<8x1xf32>
    %c0_6 = arith.constant 0 : index
    %c0_7 = arith.constant 0 : index
    %12 = vector.load %arg3[%c0_6, %c0_7] : memref<8x1xf32, #tpu.memory_space<vmem>>, vector<8x1xf32>
    tpu.vector_store %arg3[%c0_6, %c0_7], %11 {strides = array<i32>} : memref<8x1xf32, #tpu.memory_space<vmem>>, vector<8x1xf32>,
    return
  }
  func.func @transform_0(%arg0: i32) -> (i32, i32) {
    %c0_i32 = arith.constant 0 : i32
    %c0_i32_0 = arith.constant 0 : i32
    return %arg0, %c0_i32 : i32, i32
  }
  func.func @transform_1(%arg0: i32) -> (i32, i32) {
    %c0_i32 = arith.constant 0 : i32
    %c0_i32_0 = arith.constant 0 : i32
    return %arg0, %c0_i32 : i32, i32
  }
  func.func @transform_2(%arg0: i32) -> (i32, i32) {
    %c0_i32 = arith.constant 0 : i32
    %c0_i32_0 = arith.constant 0 : i32
    return %arg0, %c0_i32 : i32, i32
  }
}

</mosaic_0001>

<bundles_post_ra>
// kernel: tpu_custom_call.1
= control target key start
LH: loop header
LB: loop body
LE: loop exit
PB: predicated region body
PF: predicated region fallthrough
CT: control target
= control target key end

     0   :  { %7 = vsyncpa [#allocation3], 0  ;;  %s151_s0 = inlined_call_operand.hbm [shape: f32[8,32], index: 0, kind: input, shape index: {}]   ;;  %s152_s1 = inlined_call_operand.hbm [shape: f32[8,32], index: 1, kind: input, shape index: {}]   ;;  %s153_s2 = inlined_call_operand.vmem [shape: f32[8,1], index: 2, kind: output, shape index: {}]  }
   0x1   :  { %8 = vsyncpa [#allocation5], 0  ;;  %s107_s9 = smov [#allocation2]   ;;  %s108_s11 = smov [#allocation4]  }
   0x2   :  { %s15_s10 = sshll.u32 %s107_s9, 4  ;;  %s25_s12 = sshll.u32 %s108_s11, 4  ;;  %s16_s10 = int_to_ptr.vmem [resolvable:$true] %s15_s10  ;;  %s26_s12 = int_to_ptr.vmem [resolvable:$true] %s25_s12 }
   0x3   :  { %s59_s15 = scalar_lea.hbm %s151_s0, 128 }
   0x4   :  { %p60_p0 = scmp.ne.s32.totalorder %s151_s0, %s59_s15  ;;  %p63_p1 = scmp.lt.u32.totalorder %s59_s15, %s151_s0 }
   0x6   :  { %p65_p2 = pnand %p63_p1, %p60_p0 }
   0x8   :  { %68 = shalt.err (!%p65_p2)
}
   0x9   :  { %s69_s20 = scalar_lea.vmem %s16_s10, 128  ;;  %p74_p4 = scmp.lt.s32.totalorder %s16_s10, %s16_s10 }
   0xa   :  { %p70_p3 = scmp.ne.s32.totalorder %s16_s10, %s69_s20  ;;  %p75_p5 = scmp.lt.s32.totalorder %s69_s20, %s69_s20 }
   0xc   :  { %p76_p6 = por %p75_p5, %p74_p4 }
   0xe   :  { %p77_p7 = pnand %p76_p6, %p70_p3 }
  0x10   :  { %80 = shalt.err (!%p77_p7)
}
  0x11   :  { %18 = dma.hbm_to_vmem [thread:$0]  %s151_s0, 128, %s16_s10, [#allocation3]  }
  0x12   :  { %s81_s25 = scalar_lea.hbm %s152_s1, 128 }
  0x13   :  { %p82_p8 = scmp.ne.s32.totalorder %s152_s1, %s81_s25  ;;  %p85_p9 = scmp.lt.u32.totalorder %s81_s25, %s152_s1 }
  0x15   :  { %p87_p10 = pnand %p85_p9, %p82_p8 }
  0x17   :  { %90 = shalt.err (!%p87_p10)
}
  0x18   :  { %s91_s30 = scalar_lea.vmem %s26_s12, 128  ;;  %p96_p12 = scmp.lt.s32.totalorder %s26_s12, %s26_s12 }
  0x19   :  { %p92_p11 = scmp.ne.s32.totalorder %s26_s12, %s91_s30  ;;  %p97_p13 = scmp.lt.s32.totalorder %s91_s30, %s91_s30 }
  0x1b   :  { %p98_p0 = por %p97_p13, %p96_p12 }
  0x1d   :  { %p99_p1 = pnand %p98_p0, %p92_p11 }
  0x1f   :  { %102 = shalt.err (!%p99_p1)
}
  0x20   :  { %28 = dma.hbm_to_vmem [thread:$0]  %s152_s1, 128, %s26_s12, [#allocation5]  }
  0x21   :  { %103 = dma.done.wait [#allocation3], 128  }
  0x22   :  { %104 = vsyncadd [#allocation3], 4294967168 }
  0x23   :  { %105 = dma.done.wait [#allocation5], 128  }
  0x24   :  { %106 = vsyncadd [#allocation5], 4294967168  ;;  %v35_v0 = vld [vmem:[#allocation2] sm:$0xff]  ;;  %v38_v2 = vld [vmem:[#allocation4] sm:$0xff]  ;;  %vm40_vm0 = vcmask 261120   ;;  %vm47_vm1 = vcmask 7168  }
  0x25   :  { %v36_v1 = vmax.f32 %v35_v0, 1e-10 }
  0x27   :  { %v37_v3 = vmin.f32 %v36_v1, 1.0 }
  0x29   :  { %v39_v4 = vmul.f32 %v38_v2, %v37_v3 }
  0x2b   :  { %v41_v5 = vsel %vm40_vm0, %v39_v4, 0.0 }
  0x2c   :  { %42 = vadd.xlane.f32.xlu0 %v41_v5 }
  0xb9   :  { %v43_v6 = vpop.xlane.xlu0 %42 }
  0xba   :  { %57 = vlog2.f32 %v43_v6 }
  0xc4   :  { %v58_v7 = vpop.eup %57 }
  0xc5   :  { %v45_v8 = vmul.f32 0.6931472, %v58_v7 }
  0xc7   :  { %v46_v9 = vsub.f32 3.465736, %v45_v8 }
  0xc9   :  { %48 = vst.msk [vmem:[%s153_s2] sm:$0xff] %vm47_vm1, %v46_v9 }
  0xca   :  { %53 = vsyncpa [#allocation3], 1 }
  0xcb   :  { %54 = vsyncpa [#allocation5], 1 }

</bundles_post_ra>
